<compile_context>
chip_gen: v5e
topology: v5e:2x2
jax: 0.10.0
libtpu: 0.0.40
codegen_flags: <defaults>
</compile_context>

<pallas_src>
import jax
import jax.numpy as jnp
from jax import lax
from jax.experimental import pallas as pl
from jax.experimental.pallas import tpu as pltpu

_EPS = 1e-8                  # torch.nn.functional.cosine_similarity default
_MAX_UNROLL_CHUNKS = 64      # cap on the unrolled 128-lane chunk loop (tn <= 8192)
_MAX_LANE_PARTIAL_TB = 64    # keep 3*(tb/8) accumulator vregs well inside 64 regs


def _min_sublane(itemsize):
    # rows per natively-packed vreg: f32 -> 8, bf16/f16 -> 16, int8/fp8 -> 32
    return max(8, 32 // int(itemsize))


def _divisors(n):
    out = set()
    i = 1
    while i * i <= n:
        if n % i == 0:
            out.add(i)
            out.add(n // i)
        i += 1
    return sorted(out)


def _acc_lanes(tb, tn):
    """128 -> lane-parallel (tb,128) partial sums (VPU-only inner loop, one XLU
    reduce at finalize).  1 -> per-step XLU reduce into (tb,1).  Gated so the
    unrolled chunk loop stays small and the three accumulators don't blow up
    vreg pressure at large tb."""
    if tn % 128 == 0 and tn // 128 <= _MAX_UNROLL_CHUNKS and tb <= _MAX_LANE_PARTIAL_TB:
        return 128
    return 1


def _vmem_budget():
    """(input double-buffer budget, physical VMEM bytes) for this TPU generation."""
    try:
        phys = int(pltpu.get_tpu_info().vmem_capacity_bytes)
    except Exception:  # non-TPU tracing / older runtimes
        phys = 64 << 20
    # ~3/8 of physical VMEM for the 2-input x 2-pipeline-buffer working set,
    # capped at 48 MiB: v5e/v6e (128 MiB) -> 48 MiB, v7x (64 MiB) -> 24 MiB.
    return min((phys * 3) // 8, 48 << 20), phys


def _choose_tiles(B, N, itemsize, min_tb, budget):
    """Pick (tb, tn) maximizing bytes-per-grid-step under the VMEM budget.

    tn is always a 128-multiple divisor of N (or the full N) so the lane dim
    never violates the (8,128) rule; when over budget, tb (sublane dim) shrinks
    first.  The full-B batch tile is avoided when a smaller legal one exists so
    the 'parallel' grid axis has >= 2 blocks.
    """
    tb_cands = [d for d in _divisors(B) if d % min_tb == 0]
    if not tb_cands:
        tb_cands = [B]                      # full-extent fallback (always legal)
    elif len(tb_cands) > 1:
        tb_cands = [t for t in tb_cands if t < B] or tb_cands
    # TODO(synk): for tiny B on v7x, split the N reduction across the two cores
    # (leading core axis + per-core partials combined in the wrapper).
    tn_cands = [d for d in _divisors(N) if d % 128 == 0] or [N]

    def fits(tb, tn):
        used = 4 * tb * tn * itemsize + 3 * tb * _acc_lanes(tb, tn) * 4
        return used <= budget

    best = None
    for tn in tn_cands:
        for tb in tb_cands:
            if fits(tb, tn):
                key = (tb * tn, tn)         # max bytes/step, tie-break larger tn
                if best is None or key > best[0]:
                    best = (key, tb, tn)
    if best is None:                        # extreme shapes: smallest legal block
        return min(tb_cands), min(tn_cands)
    return best[1], best[2]


def _make_kernel(n_lane_chunks):
    """n_lane_chunks > 0: lane-partial accumulation into (tb,128) scratch with a
    statically unrolled, VPU-only chunk loop (single XLU reduce at finalize).
    n_lane_chunks == 0: per-step XLU reduce into (tb,1) scratch."""

    def kernel(x1_ref, x2_ref, loss_ref, sxy_ref, sxx_ref, syy_ref):
        k = pl.program_id(1)

        @pl.when(k == 0)
        def _init():
            sxy_ref[...] = jnp.zeros_like(sxy_ref)
            sxx_ref[...] = jnp.zeros_like(sxx_ref)
            syy_ref[...] = jnp.zeros_like(syy_ref)

        x = x1_ref[...].astype(jnp.float32)   # (tb, tn); bf16 inputs upcast here
        y = x2_ref[...].astype(jnp.float32)

        if n_lane_chunks:
            sxy, sxx, syy = sxy_ref[...], sxx_ref[...], syy_ref[...]
            for c in range(n_lane_chunks):    # static 128-lane slices, pure VPU
                xc = x[:, c * 128:(c + 1) * 128]
                yc = y[:, c * 128:(c + 1) * 128]
                sxy = sxy + xc * yc
                sxx = sxx + xc * xc
                syy = syy + yc * yc
            sxy_ref[...] = sxy
            sxx_ref[...] = sxx
            syy_ref[...] = syy
        else:
            sxy_ref[...] += jnp.sum(x * y, axis=1, keepdims=True)
            sxx_ref[...] += jnp.sum(x * x, axis=1, keepdims=True)
            syy_ref[...] += jnp.sum(y * y, axis=1, keepdims=True)

        @pl.when(k == pl.num_programs(1) - 1)
        def _finalize():
            if n_lane_chunks:
                dot = jnp.sum(sxy_ref[...], axis=1, keepdims=True)
                nxx = jnp.sum(sxx_ref[...], axis=1, keepdims=True)
                nyy = jnp.sum(syy_ref[...], axis=1, keepdims=True)
            else:
                dot, nxx, nyy = sxy_ref[...], sxx_ref[...], syy_ref[...]
            # cos = dot * rsqrt(max(|x|^2 * |y|^2, eps^2)) — matches PyTorch's
            # squared-norm-product implementation (eps = 1e-8).  Note: the
            # squared product can overflow f32 for rows with norms >~1e19,
            # exactly as torch's implementation does.
            eps2 = jnp.float32(_EPS * _EPS)
            cos = dot * lax.rsqrt(jnp.maximum(nxx * nyy, eps2))
            loss_ref[...] = (jnp.float32(1.0) - cos).astype(loss_ref.dtype)

    return kernel


def cosine_similarity_loss(x1, x2, *, input_vmem_budget=None):
    """Pallas implementation of CosineSimilarityLoss.forward; returns scalar f32.

    bf16 / f16 inputs are supported directly (halves HBM traffic); accumulation
    is always f32 inside the kernel.  `input_vmem_budget` is a test hook that
    overrides the per-generation input double-buffer budget (bytes).
    """
    assert x1.shape == x2.shape, (x1.shape, x2.shape)
    if x1.ndim == 1:
        x1, x2 = x1[None, :], x2[None, :]
    elif x1.ndim > 2:
        # F.cosine_similarity reduces over dim=1; move it last, flatten the rest.
        # NOTE: this materializes a transposed copy (one extra HBM pass over both
        # inputs) — callers with large ND tensors should pre-layout channels-last
        # and pass 2-D (rows, channels) directly.
        c = x1.shape[1]
        x1 = jnp.moveaxis(x1, 1, -1).reshape(-1, c)
        x2 = jnp.moveaxis(x2, 1, -1).reshape(-1, c)
    B, N = x1.shape

    itemsize = max(jnp.dtype(x1.dtype).itemsize, jnp.dtype(x2.dtype).itemsize)
    budget, phys_vmem = _vmem_budget()
    if input_vmem_budget is not None:
        budget = int(input_vmem_budget)
    min_tb = _min_sublane(itemsize)

    # If N is not a 128-multiple the only legal lane tile is the full row; when
    # even the smallest batch tile can't hold full rows in VMEM, zero-pad the
    # feature axis (zeros don't change any of the three sums).
    if N % 128 != 0 and 4 * min(B, min_tb) * N * itemsize > budget:
        pad = (-N) % 128
        x1 = jnp.pad(x1, ((0, 0), (0, pad)))
        x2 = jnp.pad(x2, ((0, 0), (0, pad)))
        N += pad

    tb, tn = _choose_tiles(B, N, itemsize, min_tb, budget)
    acc_lanes = _acc_lanes(tb, tn)
    n_chunks = tn // 128 if acc_lanes == 128 else 0
    grid = (B // tb, N // tn)

    # Explicitly raise the scoped-VMEM limit to cover the chosen working set
    # (2 inputs x 2 pipeline buffers + f32 accumulators + output) with headroom.
    usage = 4 * tb * tn * itemsize + 3 * tb * acc_lanes * 4 + 2 * tb * 4
    vmem_limit = int(max(16 << 20, min(phys_vmem - (8 << 20), usage + (8 << 20))))

    per_row_loss = pl.pallas_call(
        _make_kernel(n_chunks),
        out_shape=jax.ShapeDtypeStruct((B, 1), jnp.float32),
        grid_spec=pltpu.PrefetchScalarGridSpec(
            num_scalar_prefetch=0,
            grid=grid,
            in_specs=[
                pl.BlockSpec((tb, tn), lambda i, k: (i, k)),
                pl.BlockSpec((tb, tn), lambda i, k: (i, k)),
            ],
            out_specs=pl.BlockSpec((tb, 1), lambda i, k: (i, 0)),
            scratch_shapes=[
                pltpu.VMEM((tb, acc_lanes), jnp.float32),
                pltpu.VMEM((tb, acc_lanes), jnp.float32),
                pltpu.VMEM((tb, acc_lanes), jnp.float32),
            ],
        ),
        compiler_params=pltpu.CompilerParams(
            dimension_semantics=("parallel", "arbitrary"),
            vmem_limit_bytes=vmem_limit,
        ),
    )(x1, x2)

    # (B,1) -> scalar batch mean: negligible next to the streamed reduction.
    return jnp.mean(per_row_loss)


def cosine_similarity_loss_ref(x1, x2):
    """Plain-JAX reference mirroring torch.mean(1 - F.cosine_similarity(x1, x2))."""
    x1 = x1.astype(jnp.float32)
    x2 = x2.astype(jnp.float32)
    dot = jnp.sum(x1 * x2, axis=1)
    n1 = jnp.sqrt(jnp.sum(x1 * x1, axis=1))
    n2 = jnp.sqrt(jnp.sum(x2 * x2, axis=1))
    cos = dot / jnp.maximum(n1 * n2, _EPS)
    return jnp.mean(1.0 - cos)


if __name__ == "__main__":
    key = jax.random.PRNGKey(0)
    k1, k2, k3, k4 = jax.random.split(key, 4)

    # Case 1: plain 2-D f32.  Picks tb=16, tn=512 -> grid (2, 1): two blocks on
    # the 'parallel' batch axis (both v7x cores busy), reduction axis collapsed,
    # lane-partial (VPU-only) accumulation path.
    B, N = 32, 512
    x1 = jax.random.normal(k1, (B, N), dtype=jnp.float32)
    x2 = 0.5 * x1 + 0.5 * jax.random.normal(k2, (B, N), dtype=jnp.float32)
    ref = cosine_similarity_loss_ref(x1, x2)

    out = cosine_similarity_loss(x1, x2)
    jax.block_until_ready(out)
    assert jnp.allclose(out, ref, atol=1e-5, rtol=1e-5), (out, ref)

    # Case 2: artificially tiny VMEM budget so the feature axis is actually
    # streamed (multi-step reduction grid exercises init/accumulate/finalize).
    out = cosine_similarity_loss(x1, x2, input_vmem_budget=32 * 1024)
    jax.block_until_ready(out)
    assert jnp.allclose(out, ref, atol=1e-5, rtol=1e-5), (out, ref)

    # Case 3: bf16 inputs stream straight through (half the HBM traffic);
    # accumulation is still f32 inside the kernel; tb snaps to a multiple of 16.
    x1b, x2b = x1.astype(jnp.bfloat16), x2.astype(jnp.bfloat16)
    out = cosine_similarity_loss(x1b, x2b)
    jax.block_until_ready(out)
    refb = cosine_similarity_loss_ref(x1b, x2b)
    assert jnp.allclose(out, refb, atol=1e-4, rtol=1e-4), (out, refb)

    # Case 4: ND input (cosine similarity over dim=1) with a non-128-multiple
    # feature width -> full-row lane tile + direct XLU-reduce kernel variant.
    a1 = jax.random.normal(k3, (2, 24, 4, 4), dtype=jnp.float32)
    a2 = jax.random.normal(k4, (2, 24, 4, 4), dtype=jnp.float32)
    out = cosine_similarity_loss(a1, a2)
    jax.block_until_ready(out)
    c = a1.shape[1]
    refn = cosine_similarity_loss_ref(
        jnp.moveaxis(a1, 1, -1).reshape(-1, c),
        jnp.moveaxis(a2, 1, -1).reshape(-1, c))
    assert jnp.allclose(out, refn, atol=1e-5, rtol=1e-5), (out, refn)

    print("KERNEL_OK")
</pallas_src>

<mosaic_0001>
module attributes {stable_mosaic.version = 11 : i64} {
  func.func @kernel(%arg0: i32, %arg1: i32, %arg2: memref<16x512xf32, #tpu.memory_space<vmem>>, %arg3: memref<16x512xf32, #tpu.memory_space<vmem>>, %arg4: memref<16x1xf32, #tpu.memory_space<vmem>>, %arg5: memref<16x128xf32, #tpu.memory_space<vmem>>, %arg6: memref<16x128xf32, #tpu.memory_space<vmem>>, %arg7: memref<16x128xf32, #tpu.memory_space<vmem>>) attributes {dimension_semantics = [#tpu.dimension_semantics<parallel>, #tpu.dimension_semantics<arbitrary>], iteration_bounds = array<i64: 2, 1>, scalar_prefetch = 0 : i64, scratch_operands = 3 : i64, tpu.core_type = #tpu.core_type<tc>, window_params = [{transform_indices = @transform_0, window_bounds = array<i64: 16, 512>}, {transform_indices = @transform_1, window_bounds = array<i64: 16, 512>}, {transform_indices = @transform_2, window_bounds = array<i64: 16, 1>}]} {
    %c0_i32 = arith.constant 0 : i32
    %0 = arith.cmpi eq, %arg1, %c0_i32 : i32
    %1 = arith.extui %0 : i1 to i32
    %c0_i32_0 = arith.constant 0 : i32
    %2 = arith.cmpi ne, %1, %c0_i32_0 : i32
    scf.if %2 {
      %cst = arith.constant 0.000000e+00 : f32
      %46 = vector.broadcast %cst : f32 to vector<16x128xf32>
      %c0_18 = arith.constant 0 : index
      %c0_19 = arith.constant 0 : index
      %47 = vector.load %arg5[%c0_18, %c0_19] : memref<16x128xf32, #tpu.memory_space<vmem>>, vector<16x128xf32>
      tpu.vector_store %arg5[%c0_18, %c0_19], %46 {strides = array<i32>} : memref<16x128xf32, #tpu.memory_space<vmem>>, vector<16x128xf32>,
      %cst_20 = arith.constant 0.000000e+00 : f32
      %48 = vector.broadcast %cst_20 : f32 to vector<16x128xf32>
      %c0_21 = arith.constant 0 : index
      %c0_22 = arith.constant 0 : index
      %49 = vector.load %arg6[%c0_21, %c0_22] : memref<16x128xf32, #tpu.memory_space<vmem>>, vector<16x128xf32>
      tpu.vector_store %arg6[%c0_21, %c0_22], %48 {strides = array<i32>} : memref<16x128xf32, #tpu.memory_space<vmem>>, vector<16x128xf32>,
      %cst_23 = arith.constant 0.000000e+00 : f32
      %50 = vector.broadcast %cst_23 : f32 to vector<16x128xf32>
      %c0_24 = arith.constant 0 : index
      %c0_25 = arith.constant 0 : index
      %51 = vector.load %arg7[%c0_24, %c0_25] : memref<16x128xf32, #tpu.memory_space<vmem>>, vector<16x128xf32>
      tpu.vector_store %arg7[%c0_24, %c0_25], %50 {strides = array<i32>} : memref<16x128xf32, #tpu.memory_space<vmem>>, vector<16x128xf32>,
    } else {
    }
    %c0 = arith.constant 0 : index
    %c0_1 = arith.constant 0 : index
    %3 = vector.load %arg2[%c0, %c0_1] : memref<16x512xf32, #tpu.memory_space<vmem>>, vector<16x512xf32>
    %c0_2 = arith.constant 0 : index
    %c0_3 = arith.constant 0 : index
    %4 = vector.load %arg3[%c0_2, %c0_3] : memref<16x512xf32, #tpu.memory_space<vmem>>, vector<16x512xf32>
    %c0_4 = arith.constant 0 : index
    %c0_5 = arith.constant 0 : index
    %5 = vector.load %arg5[%c0_4, %c0_5] : memref<16x128xf32, #tpu.memory_space<vmem>>, vector<16x128xf32>
    %c0_6 = arith.constant 0 : index
    %c0_7 = arith.constant 0 : index
    %6 = vector.load %arg6[%c0_6, %c0_7] : memref<16x128xf32, #tpu.memory_space<vmem>>, vector<16x128xf32>
    %c0_8 = arith.constant 0 : index
    %c0_9 = arith.constant 0 : index
    %7 = vector.load %arg7[%c0_8, %c0_9] : memref<16x128xf32, #tpu.memory_space<vmem>>, vector<16x128xf32>
    %8 = vector.extract_strided_slice %3 {offsets = [0, 0], sizes = [16, 128], strides = [1, 1]} : vector<16x512xf32> to vector<16x128xf32>
    %9 = vector.extract_strided_slice %4 {offsets = [0, 0], sizes = [16, 128], strides = [1, 1]} : vector<16x512xf32> to vector<16x128xf32>
    %10 = arith.mulf %8, %9 : vector<16x128xf32>
    %11 = arith.addf %5, %10 : vector<16x128xf32>
    %12 = arith.mulf %8, %8 : vector<16x128xf32>
    %13 = arith.addf %6, %12 : vector<16x128xf32>
    %14 = arith.mulf %9, %9 : vector<16x128xf32>
    %15 = arith.addf %7, %14 : vector<16x128xf32>
    %16 = vector.extract_strided_slice %3 {offsets = [0, 128], sizes = [16, 128], strides = [1, 1]} : vector<16x512xf32> to vector<16x128xf32>
    %17 = vector.extract_strided_slice %4 {offsets = [0, 128], sizes = [16, 128], strides = [1, 1]} : vector<16x512xf32> to vector<16x128xf32>
    %18 = arith.mulf %16, %17 : vector<16x128xf32>
    %19 = arith.addf %11, %18 : vector<16x128xf32>
    %20 = arith.mulf %16, %16 : vector<16x128xf32>
    %21 = arith.addf %13, %20 : vector<16x128xf32>
    %22 = arith.mulf %17, %17 : vector<16x128xf32>
    %23 = arith.addf %15, %22 : vector<16x128xf32>
    %24 = vector.extract_strided_slice %3 {offsets = [0, 256], sizes = [16, 128], strides = [1, 1]} : vector<16x512xf32> to vector<16x128xf32>
    %25 = vector.extract_strided_slice %4 {offsets = [0, 256], sizes = [16, 128], strides = [1, 1]} : vector<16x512xf32> to vector<16x128xf32>
    %26 = arith.mulf %24, %25 : vector<16x128xf32>
    %27 = arith.addf %19, %26 : vector<16x128xf32>
    %28 = arith.mulf %24, %24 : vector<16x128xf32>
    %29 = arith.addf %21, %28 : vector<16x128xf32>
    %30 = arith.mulf %25, %25 : vector<16x128xf32>
    %31 = arith.addf %23, %30 : vector<16x128xf32>
    %32 = vector.extract_strided_slice %3 {offsets = [0, 384], sizes = [16, 128], strides = [1, 1]} : vector<16x512xf32> to vector<16x128xf32>
    %33 = vector.extract_strided_slice %4 {offsets = [0, 384], sizes = [16, 128], strides = [1, 1]} : vector<16x512xf32> to vector<16x128xf32>
    %34 = arith.mulf %32, %33 : vector<16x128xf32>
    %35 = arith.addf %27, %34 : vector<16x128xf32>
    %36 = arith.mulf %32, %32 : vector<16x128xf32>
    %37 = arith.addf %29, %36 : vector<16x128xf32>
    %38 = arith.mulf %33, %33 : vector<16x128xf32>
    %39 = arith.addf %31, %38 : vector<16x128xf32>
    %c0_10 = arith.constant 0 : index
    %c0_11 = arith.constant 0 : index
    %40 = vector.load %arg5[%c0_10, %c0_11] : memref<16x128xf32, #tpu.memory_space<vmem>>, vector<16x128xf32>
    tpu.vector_store %arg5[%c0_10, %c0_11], %35 {strides = array<i32>} : memref<16x128xf32, #tpu.memory_space<vmem>>, vector<16x128xf32>,
    %c0_12 = arith.constant 0 : index
    %c0_13 = arith.constant 0 : index
    %41 = vector.load %arg6[%c0_12, %c0_13] : memref<16x128xf32, #tpu.memory_space<vmem>>, vector<16x128xf32>
    tpu.vector_store %arg6[%c0_12, %c0_13], %37 {strides = array<i32>} : memref<16x128xf32, #tpu.memory_space<vmem>>, vector<16x128xf32>,
    %c0_14 = arith.constant 0 : index
    %c0_15 = arith.constant 0 : index
    %42 = vector.load %arg7[%c0_14, %c0_15] : memref<16x128xf32, #tpu.memory_space<vmem>>, vector<16x128xf32>
    tpu.vector_store %arg7[%c0_14, %c0_15], %39 {strides = array<i32>} : memref<16x128xf32, #tpu.memory_space<vmem>>, vector<16x128xf32>,
    %c0_i32_16 = arith.constant 0 : i32
    %43 = arith.cmpi eq, %arg1, %c0_i32_16 : i32
    %44 = arith.extui %43 : i1 to i32
    %c0_i32_17 = arith.constant 0 : i32
    %45 = arith.cmpi ne, %44, %c0_i32_17 : i32
    scf.if %45 {
      %c0_18 = arith.constant 0 : index
      %c0_19 = arith.constant 0 : index
      %46 = vector.load %arg5[%c0_18, %c0_19] : memref<16x128xf32, #tpu.memory_space<vmem>>, vector<16x128xf32>
      %cst = arith.constant dense<0.000000e+00> : vector<16xf32>
      %47 = vector.multi_reduction <add>, %46, %cst [1] : vector<16x128xf32> to vector<16xf32>
      %48 = vector.shape_cast %47 : vector<16xf32> to vector<16x1xf32>
      %c0_20 = arith.constant 0 : index
      %c0_21 = arith.constant 0 : index
      %49 = vector.load %arg6[%c0_20, %c0_21] : memref<16x128xf32, #tpu.memory_space<vmem>>, vector<16x128xf32>
      %cst_22 = arith.constant dense<0.000000e+00> : vector<16xf32>
      %50 = vector.multi_reduction <add>, %49, %cst_22 [1] : vector<16x128xf32> to vector<16xf32>
      %51 = vector.shape_cast %50 : vector<16xf32> to vector<16x1xf32>
      %c0_23 = arith.constant 0 : index
      %c0_24 = arith.constant 0 : index
      %52 = vector.load %arg7[%c0_23, %c0_24] : memref<16x128xf32, #tpu.memory_space<vmem>>, vector<16x128xf32>
      %cst_25 = arith.constant dense<0.000000e+00> : vector<16xf32>
      %53 = vector.multi_reduction <add>, %52, %cst_25 [1] : vector<16x128xf32> to vector<16xf32>
      %54 = vector.shape_cast %53 : vector<16xf32> to vector<16x1xf32>
      %55 = arith.mulf %51, %54 : vector<16x1xf32>
      %cst_26 = arith.constant 1.000000e-16 : f32
      %56 = vector.broadcast %cst_26 : f32 to vector<16x1xf32>
      %57 = arith.maximumf %55, %56 : vector<16x1xf32>
      %58 = math.rsqrt %57 : vector<16x1xf32>
      %59 = arith.mulf %48, %58 : vector<16x1xf32>
      %cst_27 = arith.constant 1.000000e+00 : f32
      %60 = vector.broadcast %cst_27 : f32 to vector<16x1xf32>
      %61 = arith.subf %60, %59 : vector<16x1xf32>
      %c0_28 = arith.constant 0 : index
      %c0_29 = arith.constant 0 : index
      %62 = vector.load %arg4[%c0_28, %c0_29] : memref<16x1xf32, #tpu.memory_space<vmem>>, vector<16x1xf32>
      tpu.vector_store %arg4[%c0_28, %c0_29], %61 {strides = array<i32>} : memref<16x1xf32, #tpu.memory_space<vmem>>, vector<16x1xf32>,
    } else {
    }
    return
  }
  func.func @transform_0(%arg0: i32, %arg1: i32) -> (i32, i32) {
    %c0_i32 = arith.constant 0 : i32
    return %arg0, %arg1 : i32, i32
  }
  func.func @transform_1(%arg0: i32, %arg1: i32) -> (i32, i32) {
    %c0_i32 = arith.constant 0 : i32
    return %arg0, %arg1 : i32, i32
  }
  func.func @transform_2(%arg0: i32, %arg1: i32) -> (i32, i32) {
    %c0_i32 = arith.constant 0 : i32
    %c0_i32_0 = arith.constant 0 : i32
    return %arg0, %c0_i32 : i32, i32
  }
}

</mosaic_0001>

<bundles_post_ra>
// kernel: tpu_custom_call.1
= control target key start
LH: loop header
LB: loop body
LE: loop exit
PB: predicated region body
PF: predicated region fallthrough
CT: control target
= control target key end

     0   :  { %7 = vsyncpa [#allocation6], 0  ;;  %s817_s0 = inlined_call_operand.hbm [shape: f32[32,512], index: 0, kind: input, shape index: {}]   ;;  %s818_s1 = inlined_call_operand.hbm [shape: f32[32,512], index: 1, kind: input, shape index: {}]   ;;  %s819_s2 = inlined_call_operand.vmem [shape: f32[32,1], index: 2, kind: output, shape index: {}]  }
   0x1   :  { %9 = vsyncpa [#allocation6 + $0x1], 0 }
   0x2   :  { %10 = vsyncpa [#allocation8], 0 }
   0x3   :  { %12 = vsyncpa [#allocation8 + $0x1], 0  ;;  %s700_s9 = smov 0   ;;  %s702_s10 = smov 0  }
   0x4   :  { %s704_s11 = smov 0   ;;  %s706_s12 = smov 0  }
   0x5   :  { %s708_s13 = smov 0   ;;  %s710_s14 = smov 0  }
   0x6 LB: > { %s478_s15 = sadd.s32 4294967295, %s681_s14   ;;  %s30_s16 = sadd.s32 1, %s677_s13  ;;  %s681_s14 = sphi %s710_s14, %s18_s14   ;;  %s677_s13 = sphi %s708_s13, %s827_s13   ;;  %s673_s12 = sphi %s706_s12, %s826_s12   ;;  %s669_s11 = sphi %s704_s11, %s825_s11   ;;  %s665_s10 = sphi %s702_s10, %s824_s10   ;;  %s661_s9 = sphi %s700_s9, %s823_s9  }
   0x7   : > { %p32_p0 = scmp.ge.s32.totalorder %s30_s16, 2  ;;  %s39_s17 = sadd.s32 1, %s669_s11 }
   0x8   : > { %p46_p1 = scmp.ne.s32.totalorder %s669_s11, %s665_s10  ;;  %p47_p2 = scmp.eq.s32.totalorder %s681_s14, 0 }
   0x9   : > { %s829_s16 = smov (%p32_p0, %s30_s16), 0  ;;  %p52_p4 = scmp.ne.s32.totalorder %s665_s10, %s661_s9 }
   0xa   : > { %p736_p3 = por %p47_p2, %p46_p1  ;;  %s34_s19 = ssub.s32 %s677_s13, %s829_s16 }
   0xb   : > { %p53_p5 = scmp.eq.s32.totalorder %s478_s15, 0  ;;  %p37_p6 = scmp.eq.s32.totalorder %s34_s19, 0 }
   0xc   : > { %p512_p8 = scmp.lt.s32.totalorder %s681_s14, 2  ;;  %s752_s22 = sand.u32 1, %s669_s11  }
   0xd   : > { %p743_p7 = por %p53_p5, %p52_p4  ;;  %s498_s23 = sshll.u32 %s677_s13, 6 }
   0xe   : > { %s749_s21 = scalar_select %p37_p6, %s669_s11, %s39_s17  }
   0xf   : > { %s482_s24 = sshll.u32 %s752_s22, 6  ;;  %s142_s27 = scalar_lea.hbm %s817_s0, %s498_s23 }
  0x10   : > { %s143_s28 = sshll.u32 %s142_s27, 4  ;;  %s134_s29 = scalar_lea.vmem [#allocation5], %s482_s24  ;;  %s144_s28 = int_to_ptr.hbm [resolvable:$true] %s143_s28 }
  0x11   : > { %s145_s30 = sshll.u32 %s134_s29, 4  ;;  %p761_p9 = pnand %p512_p8, %p736_p3  ;;  %s146_s30 = int_to_ptr.vmem [resolvable:$true] %s145_s30 }
  0x12   : > { %p490_p10 = scmp.ge.s32.totalorder %s681_s14, 1  ;;  %p178_p11 = scmp.lt.s32.totalorder %s681_s14, 3 }
  0x13   : > { %s131_s4 = scalar_lea.sflag [#allocation6], %s752_s22  ;;  %s683_s5 = smov 512  }
  0x14   : > { %s684_s6 = smov 32   ;;  %p179_p12 = pnand %p490_p10, %p178_p11 }
  0x15   : > { %508 = dma.hbm_to_vmem [thread:$0]  (!%p761_p9), %s144_s28, 1024, %s146_s30, %s131_s4, %s683_s5, %s683_s5, %s684_s6  }
  0x16   : > { %s167_s9 = scalar_lea.hbm %s818_s1, %s498_s23  ;;  %s159_s17 = scalar_lea.vmem [#allocation7], %s482_s24 }
  0x17   : > { %s168_s15 = sshll.u32 %s167_s9, 4  ;;  %s170_s18 = sshll.u32 %s159_s17, 4  ;;  %s169_s15 = int_to_ptr.hbm [resolvable:$true] %s168_s15  ;;  %s171_s18 = int_to_ptr.vmem [resolvable:$true] %s170_s18 }
  0x18   : > { %s156_s19 = scalar_lea.sflag [#allocation8], %s752_s22  ;;  %182 = sbr.rel (%p179_p12) target bundleno = 194 (0xc2), region = 28 }
  0x19   : > { %511 = dma.hbm_to_vmem [thread:$0]  (!%p761_p9), %s169_s15, 1024, %s171_s18, %s156_s19, %s683_s5, %s683_s5, %s684_s6  }
  0x1a   : > { %s184_s25 = sand.u32 (!%p179_p12), 1, %s665_s10  }
  0x1b   : > { %s491_s26 = sshll.u32 (!%p179_p12), %s184_s25, 6  ;;  %s185_s27 = scalar_lea.sflag (!%p179_p12), [#allocation6], %s184_s25 }
  0x1c   : > { %s188_s28 = scalar_lea.vmem (!%p179_p12), [#allocation5], %s491_s26 }
  0x1d   : > { %652 = dma.done.wait (%p743_p7), %s185_s27, 1024  }
  0x1e   : > { %654 = vsyncadd (%p743_p7), %s185_s27, 4294966272  ;;  %s195_s23 = scalar_lea.sflag [#allocation8], %s184_s25  ;;  %s781_s24 = scalar_lea.vmem [#allocation7], %s491_s26 }
  0x1f   : > { %656 = dma.done.wait (%p743_p7), %s195_s23, 1024  }
  0x20   : > { %658 = vsyncadd (%p743_p7), %s195_s23, 4294966272  ;;  %v249_v0 = vld [vmem:[%s188_s28 + $0x20] sm:$0xff]  ;;  %v250_v1 = vld [vmem:[%s188_s28 + $0x28] sm:$0xff]  ;;  %s493_s20 = sshll.u32 %s673_s12, 1  ;;  %vm370_vm6 = vcmask 7168  }
  0x21   : > { %v251_v2 = vld [vmem:[%s188_s28 + $0x30] sm:$0xff]  ;;  %v252_v3 = vld [vmem:[%s188_s28 + $0x38] sm:$0xff]  ;;  %v272_v4 = vmul.f32 %v249_v0, %v249_v0  ;;  %v284_v5 = vmul.f32 %v250_v1, %v250_v1  ;;  %v245_v7 = vld [vmem:[%s188_s28] sm:$0xff]  ;;  %p230_p13 = scmp.lt.s32.totalorder %s493_s20, 3 }
  0x22   : > { %v296_v6 = vmul.f32 %v251_v2, %v251_v2  ;;  %v246_v8 = vld [vmem:[%s188_s28 + $0x8] sm:$0xff]  ;;  %v247_v9 = vld [vmem:[%s188_s28 + $0x10] sm:$0xff]  ;;  %v248_v10 = vld [vmem:[%s188_s28 + $0x18] sm:$0xff]  ;;  %v271_v11 = vmul.f32 %v245_v7, %v245_v7  ;;  %v308_v15 = vmul.f32 %v252_v3, %v252_v3 }
  0x23   : > { %v283_v12 = vmul.f32 %v246_v8, %v246_v8  ;;  %v257_v13 = vld [vmem:[%s781_s24 + $0x20] sm:$0xff]  ;;  %v286_v14 = vadd.f32 %v284_v5, %v272_v4  ;;  %v295_v16 = vmul.f32 %v247_v9, %v247_v9  ;;  %v258_v17 = vld [vmem:[%s781_s24 + $0x28] sm:$0xff]  ;;  %v259_v18 = vld [vmem:[%s781_s24 + $0x30] sm:$0xff]  ;;  %v307_v21 = vmul.f32 %v248_v10, %v248_v10  ;;  %s831_s20 = smov (!%p230_p13, %s493_s20), 3 }
  0x24   : > { %v276_v19 = vmul.f32 %v257_v13, %v257_v13  ;;  %v288_v22 = vmul.f32 %v258_v17, %v258_v17  ;;  %v253_v23 = vld [vmem:[%s781_s24] sm:$0xff]  ;;  %v254_v24 = vld [vmem:[%s781_s24 + $0x8] sm:$0xff]  ;;  %v255_v25 = vld [vmem:[%s781_s24 + $0x10] sm:$0xff]  ;;  %v300_v28 = vmul.f32 %v259_v18, %v259_v18  ;;  %v268_v42 = vmul.f32 %v257_v13, %v249_v0  ;;  %s494_s12 = sshll.u32 %s831_s20, 3 }
  0x25   : > { %v285_v20 = vadd.f32 %v283_v12, %v271_v11  ;;  %v298_v26 = vadd.f32 %v296_v6, %v286_v14  ;;  %v260_v27 = vld [vmem:[%s781_s24 + $0x38] sm:$0xff]  ;;  %v275_v29 = vmul.f32 %v253_v23, %v253_v23  ;;  %v287_v30 = vmul.f32 %v254_v24, %v254_v24  ;;  %s233_s30 = scalar_lea.vmem %s819_s2, %s494_s12 }
  0x26   : > { %v290_v32 = vadd.f32 %v288_v22, %v276_v19  ;;  %v299_v33 = vmul.f32 %v255_v25, %v255_v25  ;;  %v267_v34 = vmul.f32 %v253_v23, %v245_v7  ;;  %v256_v36 = vld [vmem:[%s781_s24 + $0x18] sm:$0xff]  ;;  %v279_v38 = vmul.f32 %v254_v24, %v246_v8 }
  0x27   : > { %v297_v31 = vadd.f32 %v295_v16, %v285_v20  ;;  %v310_v35 = vadd.f32 %v308_v15, %v298_v26  ;;  %v289_v37 = vadd.f32 %v287_v30, %v275_v29  ;;  %v291_v39 = vmul.f32 %v255_v25, %v247_v9 }
  0x28   : > { %v312_v41 = vmul.f32 %v260_v27, %v260_v27  ;;  %v302_v43 = vadd.f32 %v300_v28, %v290_v32  ;;  %v281_v44 = vadd.f32 %v279_v38, %v267_v34  ;;  %v303_v45 = vmul.f32 %v256_v36, %v248_v10 }
  0x29   : > { %v309_v40 = vadd.f32 %v307_v21, %v297_v31  ;;  %334 = vadd.xlane.f32.xlu1 %v310_v35  ;;  %v280_v46 = vmul.f32 %v258_v17, %v250_v1  ;;  %v301_v47 = vadd.f32 %v299_v33, %v289_v37  ;;  %v311_v48 = vmul.f32 %v256_v36, %v256_v36 }
  0x2a   : > { %v293_v49 = vadd.f32 %v291_v39, %v281_v44  ;;  %v292_v51 = vmul.f32 %v259_v18, %v251_v2  ;;  %v314_v52 = vadd.f32 %v312_v41, %v302_v43  ;;  %v304_v56 = vmul.f32 %v260_v27, %v252_v3 }
  0x2b   : > { %332 = vadd.xlane.f32.xlu0 %v309_v40  ;;  %v282_v50 = vadd.f32 %v280_v46, %v268_v42  ;;  %v313_v54 = vadd.f32 %v311_v48, %v301_v47 }
  0x2c   : > { %v305_v53 = vadd.f32 %v303_v45, %v293_v49 }
  0x2d   : > { %v294_v55 = vadd.f32 %v292_v51, %v282_v50 }
  0x2e   : > { %326 = vadd.xlane.f32.xlu2 %v305_v53 }
  0x2f   : > { %v306_v57 = vadd.f32 %v304_v56, %v294_v55 }
  0x31   : > { %340 = vadd.xlane.f32.xlu1 %v314_v52 }
  0x33   : > { %338 = vadd.xlane.f32.xlu0 %v313_v54 }
  0x36   : > { %328 = vadd.xlane.f32.xlu2 %v306_v57 }
  0x9c   : > { %v335_v58 = vpop.xlane.xlu1 %334 }
  0x9e   : > { %v333_v59 = vpop.xlane.xlu0 %332 }
  0xa1   : > { %v327_v2 = vpop.xlane.xlu2 %326 }
  0xa4   : > { %v341_v60 = vpop.xlane.xlu1 %340 }
  0xa5   : > { %v343_v61 = vmul.f32 %v341_v60, %v335_v58 }
  0xa6   : > { %v339_v62 = vpop.xlane.xlu0 %338 }
  0xa7   : > { %v342_v63 = vmul.f32 %v339_v62, %v333_v59  ;;  %v345_v0 = vmax.f32 %v343_v61, 1e-16 }
  0xa9   : > { %v344_v1 = vmax.f32 %v342_v63, 1e-16  ;;  %563 = vrsqrt.f32 %v345_v0  ;;  %vm362_vm2 = vweird.f32 %v345_v0  ;;  %v329_v14 = vpop.xlane.xlu2 %328 }
  0xab   : > { %565 = vrsqrt.f32 %v344_v1  ;;  %vm352_vm3 = vweird.f32 %v344_v1 }
  0xaf   : > { %v564_v4 = vpop.eup %563 }
  0xb0   : > { %v357_v3 = vmul.f32 %v564_v4, %v345_v0  ;;  %vm363_vm0 = vweird.f32 %v564_v4 }
  0xb1   : > { %v566_v5 = vpop.eup %565  ;;  %vm364_vm4 = vmor %vm362_vm2, %vm363_vm0 }
  0xb2   : > { %v347_v6 = vmul.f32 %v566_v5, %v344_v1  ;;  %v358_v7 = vmul.f32 %v564_v4, %v357_v3  ;;  %vm353_vm1 = vweird.f32 %v566_v5 }
  0xb3   : > { %vm354_vm5 = vmor %vm352_vm3, %vm353_vm1 }
  0xb4   : > { %v348_v8 = vmul.f32 %v566_v5, %v347_v6  ;;  %v359_v9 = vmul.f32 0.5, %v358_v7 }
  0xb6   : > { %v349_v10 = vmul.f32 0.5, %v348_v8  ;;  %v360_v11 = vsub.f32 1.5, %v359_v9 }
  0xb8   : > { %v350_v12 = vsub.f32 1.5, %v349_v10  ;;  %v361_v13 = vmul.f32 %v564_v4, %v360_v11 }
  0xba   : > { %v351_v15 = vmul.f32 %v566_v5, %v350_v12  ;;  %v365_v16 = vsel %vm364_vm4, %v564_v4, %v361_v13 }
  0xbb   : > { %v367_v18 = vmul.f32 %v365_v16, %v329_v14 }
  0xbc   : > { %v355_v17 = vsel %vm354_vm5, %v566_v5, %v351_v15 }
  0xbd   : > { %v366_v19 = vmul.f32 %v355_v17, %v327_v2  ;;  %v369_v20 = vsub.f32 1.0, %v367_v18 }
  0xbf   : > { %v368_v21 = vsub.f32 1.0, %v366_v19  ;;  %372 = vst.msk [vmem:[%s233_s30 + $0x8] sm:$0xff] %vm370_vm6, %v369_v20 }
  0xc1   : > { %371 = vst.msk [vmem:[%s233_s30] sm:$0xff] %vm370_vm6, %v368_v21 }
  0xc2 PF: > { %s18_s14 = sadd.s32 1, %s681_s14   ;;  %s823_s9 = smov %s665_s10 }
  0xc3   : > { %p15_p0 = scmp.ge.s32.totalorder %s18_s14, 4   ;;  %s824_s10 = smov %s669_s11 }
  0xc4   : > { %s825_s11 = smov %s749_s21  ;;  %s826_s12 = smov %s677_s13 }
  0xc5   : > { %s827_s13 = smov %s829_s16  ;;  %17 = sbr.rel (!%p15_p0) target bundleno = 6 (0x6), region = 89 }
  0xca   :  { %395 = vsyncpa [#allocation6], 1 }
  0xcb   :  { %397 = vsyncpa [#allocation6 + $0x1], 1 }
  0xcc   :  { %398 = vsyncpa [#allocation8], 1 }
  0xcd   :  { %400 = vsyncpa [#allocation8 + $0x1], 1 }

</bundles_post_ra>
